<compile_context>
chip_gen: v7x
topology: tpu7x:2x2x1
jax: 0.10.0
libtpu: 0.0.40
codegen_flags: <defaults>
</compile_context>

<pallas_src>
import jax
import jax.numpy as jnp
import numpy as np
from jax.experimental import pallas as pl
from jax.experimental.pallas import tpu as pltpu


def _leaky(x, alpha):
    return jnp.where(x > 0, x, alpha * x)


# ----------------------------------------------------------------------------
# Fused Pallas kernel: num_mps MP steps + node-sum readout (single invocation)
# ----------------------------------------------------------------------------
def make_encoder_kernel(B, N, H, Eh, Eo, S, L, alpha, has_rest):
    M = B * N
    NEh = N * Eh
    NEo = N * Eo

    def kernel(*refs):
        if has_rest:
            (x_ref, w1_ref, b1_ref, w2_ref, b2_ref,
             wna_ref, wnx_ref, bn0_ref, wnr_ref, bnr_ref, out_ref) = refs
        else:
            (x_ref, w1_ref, b1_ref, w2_ref, b2_ref,
             wna_ref, wnx_ref, bn0_ref, out_ref) = refs
            wnr_ref = bnr_ref = None

        # Flatten batch into the row (sublane) axis; x arrives pre-padded to H.
        x = x_ref[...].reshape(M, H)                                     # (M, H)

        # Static unroll over MP steps (S is small).  For large S switch to
        # lax.fori_loop over the stacked weight refs to bound live ranges.
        for s in range(S):
            # Edge MLP layer 1 -- one fused matmul.
            #   w1_cat = [tile(w1a, N) | w1b]  ->  pq = [p broadcast over j | q]
            pq = jnp.dot(x, w1_ref[s], preferred_element_type=jnp.float32)  # (M, NEh+Eh)
            p_wide = pq[:, :NEh]                 # (M, NEh): p[m,e] at lane j*Eh+e
            q = pq[:, NEh:]                      # (M, Eh)

            # Move the neighbour index j onto the lane axis (lane-dense):
            # q_wide[b*N+i, j*Eh+e] = q[b*N+j, e]   (broadcast over i).
            q3 = q.reshape(B, N, Eh)
            q_flat = jnp.concatenate(
                [q3[:, j:j + 1, :] for j in range(N)], axis=-1)          # (B,1,NEh)
            q_wide = jnp.broadcast_to(q_flat, (B, N, NEh)).reshape(M, NEh)

            h = _leaky(p_wide + q_wide + b1_ref[s], alpha)               # (M, NEh)

            # Edge MLP layer 2: block-diagonal weight keeps e lane-dense.
            e = _leaky(jnp.dot(h, w2_ref[s],
                               preferred_element_type=jnp.float32)
                       + b2_ref[s], alpha)                               # (M, NEo)

            # Neighbour sum + intensity + first node-MLP layer, all folded
            # into wna_wide = tile(wna, N) * intensity.
            z = _leaky(jnp.dot(e, wna_ref[s],
                               preferred_element_type=jnp.float32)
                       + jnp.dot(x, wnx_ref[s],
                                 preferred_element_type=jnp.float32)
                       + bn0_ref[s], alpha)                              # (M, H)

            # Remaining node MLP layers (H -> H).
            if has_rest:
                wnr_s = wnr_ref[s]   # (L-1, H, H)
                bnr_s = bnr_ref[s]   # (L-1, 1, H)
                for l in range(L - 1):
                    z = _leaky(jnp.dot(z, wnr_s[l],
                                       preferred_element_type=jnp.float32)
                               + bnr_s[l], alpha)
            x = z

        # Readout: sum over the node axis (torch.sum(x, dim=-2)).
        out_ref[...] = jnp.sum(x.reshape(B, N, H), axis=1)               # (B, H)

    return kernel


# ----------------------------------------------------------------------------
# Wrapper: weight preparation (tiling / block-diagonal expansion) + pallas_call
# ----------------------------------------------------------------------------
def encoder_forward(x, params, *, hidden_node_size, alpha, intensity):
    B, N, F = x.shape
    H = hidden_node_size
    assert F <= H, "input node size must not exceed the hidden node size"

    w1a, w1b, b1 = params["w1a"], params["w1b"], params["b1"]   # (S,H,Eh) x2, (S,1,Eh)
    w2, b2 = params["w2"], params["b2"]                          # (S,Eh,Eo), (S,1,Eo)
    wn0, bn0 = params["wn0"], params["bn0"]                      # (S,Eo+H,H), (S,1,H)
    wnr, bnr = params["wnr"], params["bnr"]                      # (S,L-1,H,H), (S,L-1,1,H)

    S, _, Eh = w1a.shape
    Eo = w2.shape[2]
    L = wnr.shape[1] + 1
    has_rest = wnr.shape[1] > 0

    # ---- one-time weight prep (plain XLA, outside the kernel) ----
    # Fused edge-layer-1 weight: p broadcast over j baked into a lane-tiled w1a.
    w1_cat = jnp.concatenate([jnp.tile(w1a, (1, 1, N)), w1b], axis=2)  # (S,H,(N+1)*Eh)
    b1_wide = jnp.tile(b1, (1, 1, N))                                  # (S,1,N*Eh)
    # Block-diagonal edge-layer-2 weight (keeps the edge features lane-dense).
    eye_n = jnp.eye(N, dtype=jnp.float32)
    w2_block = jnp.einsum("jk,seo->sjeko", eye_n, w2).reshape(S, N * Eh, N * Eo)
    b2_wide = jnp.tile(b2, (1, 1, N))                                  # (S,1,N*Eo)
    # Split the first node-layer weight (avoids the lane concat [a, x]) and
    # fold neighbour-sum + intensity into the message branch.
    wna = wn0[:, :Eo, :]                                               # (S,Eo,H)
    wnx = wn0[:, Eo:, :]                                               # (S,H,H)
    wna_wide = jnp.tile(wna, (1, N, 1)) * jnp.float32(intensity)       # (S,N*Eo,H)

    # Pad input nodes to the hidden size in the wrapper (no in-kernel concat).
    x_pad = jnp.pad(x.astype(jnp.float32), ((0, 0), (0, 0), (0, H - F)))

    kernel = make_encoder_kernel(B, N, H, Eh, Eo, S, L, alpha, has_rest)

    args = [x_pad, w1_cat, b1_wide, w2_block, b2_wide, wna_wide, wnx, bn0]
    if has_rest:
        args += [wnr, bnr]

    # Single grid-less invocation: every operand lives in VMEM once (no double
    # buffering), the output is written as one full lane-dense (B, H) block.
    # At production sizes, add a batch/neighbour tiling grid per the VMEM
    # budget of the target generation and cast dot operands to bf16 (v6e/v7x).
    summed = pl.pallas_call(
        kernel,
        out_shape=jax.ShapeDtypeStruct((B, H), jnp.float32),
    )(*args)

    return summed[None, ...]      # unsqueeze(dim=0) -> (1, B, latent_node_size)


# ----------------------------------------------------------------------------
# Deterministic parameter construction (PyTorch-Linear-style uniform init),
# stacked along a leading "step" axis.
# ----------------------------------------------------------------------------
def init_params(key, *, hidden_node_size, hidden_edge_size,
                output_edge_size, num_hidden_node_layers, num_mps):
    H, Eh, Eo, L, S = (hidden_node_size, hidden_edge_size, output_edge_size,
                       num_hidden_node_layers, num_mps)

    def uniform(k, shape, fan_in):
        bound = 1.0 / np.sqrt(fan_in)
        return jax.random.uniform(k, shape, jnp.float32, -bound, bound)

    w1a, w1b, b1, w2, b2, wn0, bn0, wnr, bnr = ([] for _ in range(9))
    for _ in range(S):
        key, k1, k2, k3, k4, k5, k6, k7 = jax.random.split(key, 8)
        w1a.append(uniform(k1, (H, Eh), 2 * H))
        w1b.append(uniform(k2, (H, Eh), 2 * H))
        b1.append(uniform(k3, (1, Eh), 2 * H))
        w2.append(uniform(k4, (Eh, Eo), Eh))
        b2.append(uniform(k5, (1, Eo), Eh))
        wn0.append(uniform(k6, (Eo + H, H), Eo + H))
        bn0.append(uniform(k7, (1, H), Eo + H))
        ws, bs = [], []
        for _ in range(L - 1):
            key, kw, kb = jax.random.split(key, 3)
            ws.append(uniform(kw, (H, H), H))
            bs.append(uniform(kb, (1, H), H))
        wnr.append(jnp.stack(ws) if ws else jnp.zeros((0, H, H), jnp.float32))
        bnr.append(jnp.stack(bs) if bs else jnp.zeros((0, 1, H), jnp.float32))

    return dict(
        w1a=jnp.stack(w1a), w1b=jnp.stack(w1b), b1=jnp.stack(b1),
        w2=jnp.stack(w2), b2=jnp.stack(b2),
        wn0=jnp.stack(wn0), bn0=jnp.stack(bn0),
        wnr=jnp.stack(wnr), bnr=jnp.stack(bnr),
    )


# ----------------------------------------------------------------------------
# Pure-JAX reference (uses the un-split weights and an explicit concat)
# ----------------------------------------------------------------------------
def reference_forward(x, params, *, hidden_node_size, alpha, intensity):
    B, N, F = x.shape
    H = hidden_node_size
    x = jnp.pad(x.astype(jnp.float32), ((0, 0), (0, 0), (0, H - F)))
    S = params["w1a"].shape[0]
    Lm1 = params["wnr"].shape[1]
    for s in range(S):
        p = x @ params["w1a"][s]
        q = x @ params["w1b"][s]
        h = _leaky(p[:, :, None, :] + q[:, None, :, :] + params["b1"][s], alpha)
        e = _leaky(h @ params["w2"][s] + params["b2"][s], alpha)
        a = jnp.sum(e, axis=2) * intensity
        z = jnp.concatenate([a, x], axis=-1)
        z = _leaky(z @ params["wn0"][s] + params["bn0"][s], alpha)
        for l in range(Lm1):
            z = _leaky(z @ params["wnr"][s, l] + params["bnr"][s, l], alpha)
        x = z
    return jnp.sum(x, axis=-2)[None, ...]


# ----------------------------------------------------------------------------
if __name__ == "__main__":
    # Hyperparameters (small, consistent with Encoder.__init__).
    batch = 2
    num_nodes = 8
    node_size = 4
    latent_node_size = 8          # hidden / output node size
    num_hidden_node_layers = 2
    hidden_edge_size = 16
    output_edge_size = 8
    num_mps = 2
    alpha = 0.1
    intensity = 1.0

    key = jax.random.PRNGKey(0)
    key, xk = jax.random.split(key)
    x = jax.random.normal(xk, (batch, num_nodes, node_size), jnp.float32)

    params = init_params(
        key,
        hidden_node_size=latent_node_size,
        hidden_edge_size=hidden_edge_size,
        output_edge_size=output_edge_size,
        num_hidden_node_layers=num_hidden_node_layers,
        num_mps=num_mps,
    )

    out = encoder_forward(x, params, hidden_node_size=latent_node_size,
                          alpha=alpha, intensity=intensity)
    out = jax.block_until_ready(out)

    ref = reference_forward(x, params, hidden_node_size=latent_node_size,
                            alpha=alpha, intensity=intensity)

    assert out.shape == (1, batch, latent_node_size), out.shape
    np.testing.assert_allclose(np.asarray(out), np.asarray(ref),
                               rtol=1e-4, atol=1e-4)
    print("KERNEL_OK")
</pallas_src>

<mosaic_0001>
module attributes {stable_mosaic.version = 11 : i64} {
  func.func @kernel(%arg0: memref<2x8x8xf32, #tpu.memory_space<vmem>>, %arg1: memref<2x8x144xf32, #tpu.memory_space<vmem>>, %arg2: memref<2x1x128xf32, #tpu.memory_space<vmem>>, %arg3: memref<2x128x64xf32, #tpu.memory_space<vmem>>, %arg4: memref<2x1x64xf32, #tpu.memory_space<vmem>>, %arg5: memref<2x64x8xf32, #tpu.memory_space<vmem>>, %arg6: memref<2x8x8xf32, #tpu.memory_space<vmem>>, %arg7: memref<2x1x8xf32, #tpu.memory_space<vmem>>, %arg8: memref<2x1x8x8xf32, #tpu.memory_space<vmem>>, %arg9: memref<2x1x1x8xf32, #tpu.memory_space<vmem>>, %arg10: memref<2x8xf32, #tpu.memory_space<vmem>>) attributes {dimension_semantics = [], scalar_prefetch = 0 : i64, scratch_operands = 0 : i64, tpu.core_type = #tpu.core_type<tc>} {
    %c0 = arith.constant 0 : index
    %c0_0 = arith.constant 0 : index
    %c0_1 = arith.constant 0 : index
    %0 = vector.load %arg0[%c0, %c0_0, %c0_1] : memref<2x8x8xf32, #tpu.memory_space<vmem>>, vector<2x8x8xf32>
    %1 = vector.shape_cast %0 : vector<2x8x8xf32> to vector<16x8xf32>
    %c0_2 = arith.constant 0 : index
    %c0_3 = arith.constant 0 : index
    %c0_4 = arith.constant 0 : index
    %2 = vector.load %arg1[%c0_2, %c0_3, %c0_4] : memref<2x8x144xf32, #tpu.memory_space<vmem>>, vector<1x8x144xf32>
    %3 = vector.shape_cast %2 : vector<1x8x144xf32> to vector<8x144xf32>
    %cst = arith.constant dense<0.000000e+00> : vector<16x144xf32>
    %4 = tpu.matmul %1, %3, %cst {dimension_numbers = #tpu.dot_dimension_numbers<[1], [0], [0], [1], [0, 0, 1, 1], [], []>} : vector<16x8xf32>, vector<8x144xf32>, vector<16x144xf32> -> vector<16x144xf32>
    %5 = vector.extract_strided_slice %4 {offsets = [0, 0], sizes = [16, 128], strides = [1, 1]} : vector<16x144xf32> to vector<16x128xf32>
    %6 = vector.extract_strided_slice %4 {offsets = [0, 128], sizes = [16, 16], strides = [1, 1]} : vector<16x144xf32> to vector<16x16xf32>
    %7 = vector.shape_cast %6 : vector<16x16xf32> to vector<2x8x16xf32>
    %8 = vector.extract_strided_slice %7 {offsets = [0, 0, 0], sizes = [2, 1, 16], strides = [1, 1, 1]} : vector<2x8x16xf32> to vector<2x1x16xf32>
    %9 = vector.extract_strided_slice %7 {offsets = [0, 1, 0], sizes = [2, 1, 16], strides = [1, 1, 1]} : vector<2x8x16xf32> to vector<2x1x16xf32>
    %10 = vector.extract_strided_slice %7 {offsets = [0, 2, 0], sizes = [2, 1, 16], strides = [1, 1, 1]} : vector<2x8x16xf32> to vector<2x1x16xf32>
    %11 = vector.extract_strided_slice %7 {offsets = [0, 3, 0], sizes = [2, 1, 16], strides = [1, 1, 1]} : vector<2x8x16xf32> to vector<2x1x16xf32>
    %12 = vector.extract_strided_slice %7 {offsets = [0, 4, 0], sizes = [2, 1, 16], strides = [1, 1, 1]} : vector<2x8x16xf32> to vector<2x1x16xf32>
    %13 = vector.extract_strided_slice %7 {offsets = [0, 5, 0], sizes = [2, 1, 16], strides = [1, 1, 1]} : vector<2x8x16xf32> to vector<2x1x16xf32>
    %14 = vector.extract_strided_slice %7 {offsets = [0, 6, 0], sizes = [2, 1, 16], strides = [1, 1, 1]} : vector<2x8x16xf32> to vector<2x1x16xf32>
    %15 = vector.extract_strided_slice %7 {offsets = [0, 7, 0], sizes = [2, 1, 16], strides = [1, 1, 1]} : vector<2x8x16xf32> to vector<2x1x16xf32>
    %16 = tpu.concatenate %8, %9, %10, %11, %12, %13, %14, %15 in 2 : vector<2x1x16xf32>, vector<2x1x16xf32>, vector<2x1x16xf32>, vector<2x1x16xf32>, vector<2x1x16xf32>, vector<2x1x16xf32>, vector<2x1x16xf32>, vector<2x1x16xf32> -> vector<2x1x128xf32>
    %17 = vector.shape_cast %16 : vector<2x1x128xf32> to vector<2x1x128xf32>
    %18 = vector.broadcast %17 : vector<2x1x128xf32> to vector<2x8x128xf32>
    %19 = vector.shape_cast %18 : vector<2x8x128xf32> to vector<16x128xf32>
    %20 = arith.addf %5, %19 : vector<16x128xf32>
    %c0_5 = arith.constant 0 : index
    %c0_6 = arith.constant 0 : index
    %c0_7 = arith.constant 0 : index
    %21 = vector.load %arg2[%c0_5, %c0_6, %c0_7] : memref<2x1x128xf32, #tpu.memory_space<vmem>>, vector<1x1x128xf32>
    %22 = vector.shape_cast %21 : vector<1x1x128xf32> to vector<1x128xf32>
    %23 = vector.broadcast %22 : vector<1x128xf32> to vector<16x128xf32>
    %24 = arith.addf %20, %23 : vector<16x128xf32>
    %cst_8 = arith.constant 0.000000e+00 : f32
    %25 = vector.broadcast %cst_8 : f32 to vector<16x128xf32>
    %26 = arith.cmpf ogt, %24, %25 : vector<16x128xf32>
    %cst_9 = arith.constant 1.000000e-01 : f32
    %27 = vector.broadcast %cst_9 : f32 to vector<16x128xf32>
    %28 = arith.mulf %27, %24 : vector<16x128xf32>
    %29 = arith.select %26, %24, %28 : vector<16x128xi1>, vector<16x128xf32>
    %c0_10 = arith.constant 0 : index
    %c0_11 = arith.constant 0 : index
    %c0_12 = arith.constant 0 : index
    %30 = vector.load %arg3[%c0_10, %c0_11, %c0_12] : memref<2x128x64xf32, #tpu.memory_space<vmem>>, vector<1x128x64xf32>
    %31 = vector.shape_cast %30 : vector<1x128x64xf32> to vector<128x64xf32>
    %cst_13 = arith.constant dense<0.000000e+00> : vector<16x64xf32>
    %32 = tpu.matmul %29, %31, %cst_13 {dimension_numbers = #tpu.dot_dimension_numbers<[1], [0], [0], [1], [0, 0, 1, 1], [], []>} : vector<16x128xf32>, vector<128x64xf32>, vector<16x64xf32> -> vector<16x64xf32>
    %c0_14 = arith.constant 0 : index
    %c0_15 = arith.constant 0 : index
    %c0_16 = arith.constant 0 : index
    %33 = vector.load %arg4[%c0_14, %c0_15, %c0_16] : memref<2x1x64xf32, #tpu.memory_space<vmem>>, vector<1x1x64xf32>
    %34 = vector.shape_cast %33 : vector<1x1x64xf32> to vector<1x64xf32>
    %35 = vector.broadcast %34 : vector<1x64xf32> to vector<16x64xf32>
    %36 = arith.addf %32, %35 : vector<16x64xf32>
    %cst_17 = arith.constant 0.000000e+00 : f32
    %37 = vector.broadcast %cst_17 : f32 to vector<16x64xf32>
    %38 = arith.cmpf ogt, %36, %37 : vector<16x64xf32>
    %cst_18 = arith.constant 1.000000e-01 : f32
    %39 = vector.broadcast %cst_18 : f32 to vector<16x64xf32>
    %40 = arith.mulf %39, %36 : vector<16x64xf32>
    %41 = arith.select %38, %36, %40 : vector<16x64xi1>, vector<16x64xf32>
    %c0_19 = arith.constant 0 : index
    %c0_20 = arith.constant 0 : index
    %c0_21 = arith.constant 0 : index
    %42 = vector.load %arg5[%c0_19, %c0_20, %c0_21] : memref<2x64x8xf32, #tpu.memory_space<vmem>>, vector<1x64x8xf32>
    %43 = vector.shape_cast %42 : vector<1x64x8xf32> to vector<64x8xf32>
    %cst_22 = arith.constant dense<0.000000e+00> : vector<16x8xf32>
    %44 = tpu.matmul %41, %43, %cst_22 {dimension_numbers = #tpu.dot_dimension_numbers<[1], [0], [0], [1], [0, 0, 1, 1], [], []>} : vector<16x64xf32>, vector<64x8xf32>, vector<16x8xf32> -> vector<16x8xf32>
    %c0_23 = arith.constant 0 : index
    %c0_24 = arith.constant 0 : index
    %c0_25 = arith.constant 0 : index
    %45 = vector.load %arg6[%c0_23, %c0_24, %c0_25] : memref<2x8x8xf32, #tpu.memory_space<vmem>>, vector<1x8x8xf32>
    %46 = vector.shape_cast %45 : vector<1x8x8xf32> to vector<8x8xf32>
    %cst_26 = arith.constant dense<0.000000e+00> : vector<16x8xf32>
    %47 = tpu.matmul %1, %46, %cst_26 {dimension_numbers = #tpu.dot_dimension_numbers<[1], [0], [0], [1], [0, 0, 1, 1], [], []>} : vector<16x8xf32>, vector<8x8xf32>, vector<16x8xf32> -> vector<16x8xf32>
    %48 = arith.addf %44, %47 : vector<16x8xf32>
    %c0_27 = arith.constant 0 : index
    %c0_28 = arith.constant 0 : index
    %c0_29 = arith.constant 0 : index
    %49 = vector.load %arg7[%c0_27, %c0_28, %c0_29] : memref<2x1x8xf32, #tpu.memory_space<vmem>>, vector<1x1x8xf32>
    %50 = vector.shape_cast %49 : vector<1x1x8xf32> to vector<1x8xf32>
    %51 = vector.broadcast %50 : vector<1x8xf32> to vector<16x8xf32>
    %52 = arith.addf %48, %51 : vector<16x8xf32>
    %cst_30 = arith.constant 0.000000e+00 : f32
    %53 = vector.broadcast %cst_30 : f32 to vector<16x8xf32>
    %54 = arith.cmpf ogt, %52, %53 : vector<16x8xf32>
    %cst_31 = arith.constant 1.000000e-01 : f32
    %55 = vector.broadcast %cst_31 : f32 to vector<16x8xf32>
    %56 = arith.mulf %55, %52 : vector<16x8xf32>
    %57 = arith.select %54, %52, %56 : vector<16x8xi1>, vector<16x8xf32>
    %c0_32 = arith.constant 0 : index
    %c0_33 = arith.constant 0 : index
    %c0_34 = arith.constant 0 : index
    %c0_35 = arith.constant 0 : index
    %58 = vector.load %arg8[%c0_32, %c0_33, %c0_34, %c0_35] : memref<2x1x8x8xf32, #tpu.memory_space<vmem>>, vector<1x1x8x8xf32>
    %59 = vector.shape_cast %58 : vector<1x1x8x8xf32> to vector<1x8x8xf32>
    %c0_36 = arith.constant 0 : index
    %c0_37 = arith.constant 0 : index
    %c0_38 = arith.constant 0 : index
    %c0_39 = arith.constant 0 : index
    %60 = vector.load %arg9[%c0_36, %c0_37, %c0_38, %c0_39] : memref<2x1x1x8xf32, #tpu.memory_space<vmem>>, vector<1x1x1x8xf32>
    %61 = vector.shape_cast %60 : vector<1x1x1x8xf32> to vector<1x1x8xf32>
    %62 = vector.shape_cast %59 : vector<1x8x8xf32> to vector<8x8xf32>
    %cst_40 = arith.constant dense<0.000000e+00> : vector<16x8xf32>
    %63 = tpu.matmul %57, %62, %cst_40 {dimension_numbers = #tpu.dot_dimension_numbers<[1], [0], [0], [1], [0, 0, 1, 1], [], []>} : vector<16x8xf32>, vector<8x8xf32>, vector<16x8xf32> -> vector<16x8xf32>
    %64 = vector.shape_cast %61 : vector<1x1x8xf32> to vector<1x8xf32>
    %65 = vector.broadcast %64 : vector<1x8xf32> to vector<16x8xf32>
    %66 = arith.addf %63, %65 : vector<16x8xf32>
    %cst_41 = arith.constant 0.000000e+00 : f32
    %67 = vector.broadcast %cst_41 : f32 to vector<16x8xf32>
    %68 = arith.cmpf ogt, %66, %67 : vector<16x8xf32>
    %cst_42 = arith.constant 1.000000e-01 : f32
    %69 = vector.broadcast %cst_42 : f32 to vector<16x8xf32>
    %70 = arith.mulf %69, %66 : vector<16x8xf32>
    %71 = arith.select %68, %66, %70 : vector<16x8xi1>, vector<16x8xf32>
    %c1 = arith.constant 1 : index
    %c0_43 = arith.constant 0 : index
    %c0_44 = arith.constant 0 : index
    %72 = vector.load %arg1[%c1, %c0_43, %c0_44] : memref<2x8x144xf32, #tpu.memory_space<vmem>>, vector<1x8x144xf32>
    %73 = vector.shape_cast %72 : vector<1x8x144xf32> to vector<8x144xf32>
    %cst_45 = arith.constant dense<0.000000e+00> : vector<16x144xf32>
    %74 = tpu.matmul %71, %73, %cst_45 {dimension_numbers = #tpu.dot_dimension_numbers<[1], [0], [0], [1], [0, 0, 1, 1], [], []>} : vector<16x8xf32>, vector<8x144xf32>, vector<16x144xf32> -> vector<16x144xf32>
    %75 = vector.extract_strided_slice %74 {offsets = [0, 0], sizes = [16, 128], strides = [1, 1]} : vector<16x144xf32> to vector<16x128xf32>
    %76 = vector.extract_strided_slice %74 {offsets = [0, 128], sizes = [16, 16], strides = [1, 1]} : vector<16x144xf32> to vector<16x16xf32>
    %77 = vector.shape_cast %76 : vector<16x16xf32> to vector<2x8x16xf32>
    %78 = vector.extract_strided_slice %77 {offsets = [0, 0, 0], sizes = [2, 1, 16], strides = [1, 1, 1]} : vector<2x8x16xf32> to vector<2x1x16xf32>
    %79 = vector.extract_strided_slice %77 {offsets = [0, 1, 0], sizes = [2, 1, 16], strides = [1, 1, 1]} : vector<2x8x16xf32> to vector<2x1x16xf32>
    %80 = vector.extract_strided_slice %77 {offsets = [0, 2, 0], sizes = [2, 1, 16], strides = [1, 1, 1]} : vector<2x8x16xf32> to vector<2x1x16xf32>
    %81 = vector.extract_strided_slice %77 {offsets = [0, 3, 0], sizes = [2, 1, 16], strides = [1, 1, 1]} : vector<2x8x16xf32> to vector<2x1x16xf32>
    %82 = vector.extract_strided_slice %77 {offsets = [0, 4, 0], sizes = [2, 1, 16], strides = [1, 1, 1]} : vector<2x8x16xf32> to vector<2x1x16xf32>
    %83 = vector.extract_strided_slice %77 {offsets = [0, 5, 0], sizes = [2, 1, 16], strides = [1, 1, 1]} : vector<2x8x16xf32> to vector<2x1x16xf32>
    %84 = vector.extract_strided_slice %77 {offsets = [0, 6, 0], sizes = [2, 1, 16], strides = [1, 1, 1]} : vector<2x8x16xf32> to vector<2x1x16xf32>
    %85 = vector.extract_strided_slice %77 {offsets = [0, 7, 0], sizes = [2, 1, 16], strides = [1, 1, 1]} : vector<2x8x16xf32> to vector<2x1x16xf32>
    %86 = tpu.concatenate %78, %79, %80, %81, %82, %83, %84, %85 in 2 : vector<2x1x16xf32>, vector<2x1x16xf32>, vector<2x1x16xf32>, vector<2x1x16xf32>, vector<2x1x16xf32>, vector<2x1x16xf32>, vector<2x1x16xf32>, vector<2x1x16xf32> -> vector<2x1x128xf32>
    %87 = vector.shape_cast %86 : vector<2x1x128xf32> to vector<2x1x128xf32>
    %88 = vector.broadcast %87 : vector<2x1x128xf32> to vector<2x8x128xf32>
    %89 = vector.shape_cast %88 : vector<2x8x128xf32> to vector<16x128xf32>
    %90 = arith.addf %75, %89 : vector<16x128xf32>
    %c1_46 = arith.constant 1 : index
    %c0_47 = arith.constant 0 : index
    %c0_48 = arith.constant 0 : index
    %91 = vector.load %arg2[%c1_46, %c0_47, %c0_48] : memref<2x1x128xf32, #tpu.memory_space<vmem>>, vector<1x1x128xf32>
    %92 = vector.shape_cast %91 : vector<1x1x128xf32> to vector<1x128xf32>
    %93 = vector.broadcast %92 : vector<1x128xf32> to vector<16x128xf32>
    %94 = arith.addf %90, %93 : vector<16x128xf32>
    %cst_49 = arith.constant 0.000000e+00 : f32
    %95 = vector.broadcast %cst_49 : f32 to vector<16x128xf32>
    %96 = arith.cmpf ogt, %94, %95 : vector<16x128xf32>
    %cst_50 = arith.constant 1.000000e-01 : f32
    %97 = vector.broadcast %cst_50 : f32 to vector<16x128xf32>
    %98 = arith.mulf %97, %94 : vector<16x128xf32>
    %99 = arith.select %96, %94, %98 : vector<16x128xi1>, vector<16x128xf32>
    %c1_51 = arith.constant 1 : index
    %c0_52 = arith.constant 0 : index
    %c0_53 = arith.constant 0 : index
    %100 = vector.load %arg3[%c1_51, %c0_52, %c0_53] : memref<2x128x64xf32, #tpu.memory_space<vmem>>, vector<1x128x64xf32>
    %101 = vector.shape_cast %100 : vector<1x128x64xf32> to vector<128x64xf32>
    %cst_54 = arith.constant dense<0.000000e+00> : vector<16x64xf32>
    %102 = tpu.matmul %99, %101, %cst_54 {dimension_numbers = #tpu.dot_dimension_numbers<[1], [0], [0], [1], [0, 0, 1, 1], [], []>} : vector<16x128xf32>, vector<128x64xf32>, vector<16x64xf32> -> vector<16x64xf32>
    %c1_55 = arith.constant 1 : index
    %c0_56 = arith.constant 0 : index
    %c0_57 = arith.constant 0 : index
    %103 = vector.load %arg4[%c1_55, %c0_56, %c0_57] : memref<2x1x64xf32, #tpu.memory_space<vmem>>, vector<1x1x64xf32>
    %104 = vector.shape_cast %103 : vector<1x1x64xf32> to vector<1x64xf32>
    %105 = vector.broadcast %104 : vector<1x64xf32> to vector<16x64xf32>
    %106 = arith.addf %102, %105 : vector<16x64xf32>
    %cst_58 = arith.constant 0.000000e+00 : f32
    %107 = vector.broadcast %cst_58 : f32 to vector<16x64xf32>
    %108 = arith.cmpf ogt, %106, %107 : vector<16x64xf32>
    %cst_59 = arith.constant 1.000000e-01 : f32
    %109 = vector.broadcast %cst_59 : f32 to vector<16x64xf32>
    %110 = arith.mulf %109, %106 : vector<16x64xf32>
    %111 = arith.select %108, %106, %110 : vector<16x64xi1>, vector<16x64xf32>
    %c1_60 = arith.constant 1 : index
    %c0_61 = arith.constant 0 : index
    %c0_62 = arith.constant 0 : index
    %112 = vector.load %arg5[%c1_60, %c0_61, %c0_62] : memref<2x64x8xf32, #tpu.memory_space<vmem>>, vector<1x64x8xf32>
    %113 = vector.shape_cast %112 : vector<1x64x8xf32> to vector<64x8xf32>
    %cst_63 = arith.constant dense<0.000000e+00> : vector<16x8xf32>
    %114 = tpu.matmul %111, %113, %cst_63 {dimension_numbers = #tpu.dot_dimension_numbers<[1], [0], [0], [1], [0, 0, 1, 1], [], []>} : vector<16x64xf32>, vector<64x8xf32>, vector<16x8xf32> -> vector<16x8xf32>
    %c1_64 = arith.constant 1 : index
    %c0_65 = arith.constant 0 : index
    %c0_66 = arith.constant 0 : index
    %115 = vector.load %arg6[%c1_64, %c0_65, %c0_66] : memref<2x8x8xf32, #tpu.memory_space<vmem>>, vector<1x8x8xf32>
    %116 = vector.shape_cast %115 : vector<1x8x8xf32> to vector<8x8xf32>
    %cst_67 = arith.constant dense<0.000000e+00> : vector<16x8xf32>
    %117 = tpu.matmul %71, %116, %cst_67 {dimension_numbers = #tpu.dot_dimension_numbers<[1], [0], [0], [1], [0, 0, 1, 1], [], []>} : vector<16x8xf32>, vector<8x8xf32>, vector<16x8xf32> -> vector<16x8xf32>
    %118 = arith.addf %114, %117 : vector<16x8xf32>
    %c1_68 = arith.constant 1 : index
    %c0_69 = arith.constant 0 : index
    %c0_70 = arith.constant 0 : index
    %119 = vector.load %arg7[%c1_68, %c0_69, %c0_70] : memref<2x1x8xf32, #tpu.memory_space<vmem>>, vector<1x1x8xf32>
    %120 = vector.shape_cast %119 : vector<1x1x8xf32> to vector<1x8xf32>
    %121 = vector.broadcast %120 : vector<1x8xf32> to vector<16x8xf32>
    %122 = arith.addf %118, %121 : vector<16x8xf32>
    %cst_71 = arith.constant 0.000000e+00 : f32
    %123 = vector.broadcast %cst_71 : f32 to vector<16x8xf32>
    %124 = arith.cmpf ogt, %122, %123 : vector<16x8xf32>
    %cst_72 = arith.constant 1.000000e-01 : f32
    %125 = vector.broadcast %cst_72 : f32 to vector<16x8xf32>
    %126 = arith.mulf %125, %122 : vector<16x8xf32>
    %127 = arith.select %124, %122, %126 : vector<16x8xi1>, vector<16x8xf32>
    %c1_73 = arith.constant 1 : index
    %c0_74 = arith.constant 0 : index
    %c0_75 = arith.constant 0 : index
    %c0_76 = arith.constant 0 : index
    %128 = vector.load %arg8[%c1_73, %c0_74, %c0_75, %c0_76] : memref<2x1x8x8xf32, #tpu.memory_space<vmem>>, vector<1x1x8x8xf32>
    %129 = vector.shape_cast %128 : vector<1x1x8x8xf32> to vector<1x8x8xf32>
    %c1_77 = arith.constant 1 : index
    %c0_78 = arith.constant 0 : index
    %c0_79 = arith.constant 0 : index
    %c0_80 = arith.constant 0 : index
    %130 = vector.load %arg9[%c1_77, %c0_78, %c0_79, %c0_80] : memref<2x1x1x8xf32, #tpu.memory_space<vmem>>, vector<1x1x1x8xf32>
    %131 = vector.shape_cast %130 : vector<1x1x1x8xf32> to vector<1x1x8xf32>
    %132 = vector.shape_cast %129 : vector<1x8x8xf32> to vector<8x8xf32>
    %cst_81 = arith.constant dense<0.000000e+00> : vector<16x8xf32>
    %133 = tpu.matmul %127, %132, %cst_81 {dimension_numbers = #tpu.dot_dimension_numbers<[1], [0], [0], [1], [0, 0, 1, 1], [], []>} : vector<16x8xf32>, vector<8x8xf32>, vector<16x8xf32> -> vector<16x8xf32>
    %134 = vector.shape_cast %131 : vector<1x1x8xf32> to vector<1x8xf32>
    %135 = vector.broadcast %134 : vector<1x8xf32> to vector<16x8xf32>
    %136 = arith.addf %133, %135 : vector<16x8xf32>
    %cst_82 = arith.constant 0.000000e+00 : f32
    %137 = vector.broadcast %cst_82 : f32 to vector<16x8xf32>
    %138 = arith.cmpf ogt, %136, %137 : vector<16x8xf32>
    %cst_83 = arith.constant 1.000000e-01 : f32
    %139 = vector.broadcast %cst_83 : f32 to vector<16x8xf32>
    %140 = arith.mulf %139, %136 : vector<16x8xf32>
    %141 = arith.select %138, %136, %140 : vector<16x8xi1>, vector<16x8xf32>
    %142 = vector.shape_cast %141 : vector<16x8xf32> to vector<2x8x8xf32>
    %cst_84 = arith.constant dense<0.000000e+00> : vector<2x8xf32>
    %143 = vector.multi_reduction <add>, %142, %cst_84 [1] : vector<2x8x8xf32> to vector<2x8xf32>
    %c0_85 = arith.constant 0 : index
    %c0_86 = arith.constant 0 : index
    %144 = vector.load %arg10[%c0_85, %c0_86] : memref<2x8xf32, #tpu.memory_space<vmem>>, vector<2x8xf32>
    tpu.vector_store %arg10[%c0_85, %c0_86], %143 {strides = array<i32>} : memref<2x8xf32, #tpu.memory_space<vmem>>, vector<2x8xf32>,
    return
  }
}

</mosaic_0001>

<bundles_post_ra>
// kernel: tpu_custom_call.1
= control target key start
LH: loop header
LB: loop body
LE: loop exit
PB: predicated region body
PF: predicated region fallthrough
CT: control target
= control target key end

     0   :  { %vm40_vm0 = vcmask 64512   ;;  %v1597_v3 = vmov 0.0   ;;  %s2011_s0 = inlined_call_operand.vmem [shape: f32[2,8,8], index: 0, kind: input, shape index: {}]   ;;  %s2012_s1 = inlined_call_operand.vmem [shape: f32[2,8,144], index: 1, kind: input, shape index: {}]   ;;  %s2013_s2 = inlined_call_operand.vmem [shape: f32[2,1,128], index: 2, kind: input, shape index: {}]   ;;  %s2014_s3 = inlined_call_operand.vmem [shape: f32[2,128,64], index: 3, kind: input, shape index: {}]   ;;  %s2015_s4 = inlined_call_operand.vmem [shape: f32[2,1,64], index: 4, kind: input, shape index: {}]   ;;  %s2016_s5 = inlined_call_operand.vmem [shape: f32[2,64,8], index: 5, kind: input, shape index: {}]   ;;  %s2017_s6 = inlined_call_operand.vmem [shape: f32[2,8,8], index: 6, kind: input, shape index: {}]   ;;  %s2018_s7 = inlined_call_operand.vmem [shape: f32[2,1,8], index: 7, kind: input, shape index: {}]   ;;  %s2019_s8 = inlined_call_operand.vmem [shape: f32[2,1,8,8], index: 8, kind: input, shape index: {}]   ;;  %s2020_s9 = inlined_call_operand.vmem [shape: f32[2,1,1,8], index: 9, kind: input, shape index: {}]   ;;  %s2021_s10 = inlined_call_operand.hbm [shape: f32[2,8], index: 10, kind: output, shape index: {}]  }
   0x1   :  { %v39_v0 = vld [vmem:[%s2012_s1 + $0x8] sm:$0xff]  ;;  %v38_v1 = vld [vmem:[%s2012_s1] sm:$0xff]  ;;  %111 = vmatprep.mubr.f32.mxu0 %v1597_v3 }
   0x2   :  { %v36_v2 = vld [vmem:[%s2011_s0] sm:$0xff]  ;;  %47 = vmatprep.subr.mxu0 %v39_v0 }
   0x3   :  { %15 = vsyncpa [#allocation3], 0  ;;  %48 = vmatpush1.msra.mxu0 %v38_v1  ;;  %v1676_v4 = vld [vmem:[%s2011_s0 + $0x8] sm:$0xff]  ;;  %v228_v5 = vld [vmem:[%s2014_s3] sm:$0xff]  ;;  %s1598_s16 = smov 32   ;;  %s1599_s17 = smov 16   ;;  %v203_v62 = vlaneseq }
   0x4   :  { %1212 = vmatmul.mubr.msk.f32.vlgmr.msra.gmra.mrb[0].mxu0 %vm40_vm0, %v36_v2  ;;  %v229_v6 = vld [vmem:[%s2014_s3 + $0x8] sm:$0xff]  ;;  %v230_v8 = vld [vmem:[%s2014_s3 + $0x10] sm:$0xff]  ;;  %v231_v9 = vld [vmem:[%s2014_s3 + $0x18] sm:$0xff]  ;;  %s1600_s18 = smov 48   ;;  %s1601_s23 = smov 64   ;;  %vm182_vm1 = vcmask 130048  }
   0x5   :  { %117 = vmatprep.mubr.f32.mxu0 %v1597_v3  ;;  %v1464_v7 = vpack.c.bf16 %v229_v6, %v228_v5  ;;  %v1468_v10 = vpack.c.bf16 %v231_v9, %v230_v8  ;;  %v232_v11 = vld [vmem:[%s2014_s3 + $0x20] sm:$0xff]  ;;  %v233_v12 = vld [vmem:[%s2014_s3 + $0x28] sm:$0xff]  ;;  %v234_v18 = vld [vmem:[%s2014_s3 + $0x30] sm:$0xff]  ;;  %s1602_s27 = smov 80   ;;  %s1603_s19 = smov 96   ;;  %vm185_vm2 = vcmask 261120  }
   0x6   :  { %v1472_v14 = vpack.c.bf16 %v233_v12, %v232_v11  ;;  %v235_v19 = vld [vmem:[%s2014_s3 + $0x38] sm:$0xff]  ;;  %v236_v25 = vld [vmem:[%s2014_s3 + $0x40] sm:$0xff]  ;;  %v237_v26 = vld [vmem:[%s2014_s3 + $0x48] sm:$0xff]  ;;  %s1604_s11 = smov 112   ;;  %vm188_vm3 = vcmask 392192   ;;  %v204_v5 = vshrl.u32 %v203_v62, 7 }
   0x7   :  { %1465 = vmatprep.subr.bf16.mxu1 %v1464_v7  ;;  %v1476_v21 = vpack.c.bf16 %v235_v19, %v234_v18  ;;  %v1480_v27 = vpack.c.bf16 %v237_v26, %v236_v25  ;;  %v238_v30 = vld [vmem:[%s2014_s3 + $0x50] sm:$0xff]  ;;  %v239_v31 = vld [vmem:[%s2014_s3 + $0x58] sm:$0xff]  ;;  %v240_v35 = vld [vmem:[%s2014_s3 + $0x60] sm:$0xff]  ;;  %vm191_vm4 = vcmask 523264   ;;  %vm194_vm5 = vcmask 654336  }
   0x8   :  { %1213 = vmatmul.mubr.msk.f32.gmra.mrb[2].mxu0 %vm40_vm0, %v1676_v4  ;;  %1467 = vmatpush3.bf16.msra.mxu1 %v1464_v7  ;;  %v1484_v32 = vpack.c.bf16 %v239_v31, %v238_v30  ;;  %v241_v36 = vld [vmem:[%s2014_s3 + $0x68] sm:$0xff]  ;;  %v242_v40 = vld [vmem:[%s2014_s3 + $0x70] sm:$0xff]  ;;  %v243_v41 = vld [vmem:[%s2014_s3 + $0x78] sm:$0xff]  ;;  %vm197_vm6 = vcmask 785408   ;;  %vm200_vm7 = vcmask 916480  }
   0x9   :  { %1373 = vmatprep.mubr.msk.f32.mxu0 %vm40_vm0, %v36_v2  ;;  %1469 = vmatprep.subr.bf16.mxu1 %v1468_v10  ;;  %v1488_v37 = vpack.c.bf16 %v241_v36, %v240_v35  ;;  %v1492_v42 = vpack.c.bf16 %v243_v41, %v242_v40  ;;  %v340_v47 = vld [vmem:[%s2017_s6] sm:$0xff]  ;;  %v333_v49 = vld [vmem:[%s2016_s5 + $0x8] sm:$0xff]  ;;  %v334_v51 = vld [vmem:[%s2016_s5 + $0x10] sm:$0xff] }
   0xa   :  { %v332_v48 = vld [vmem:[%s2016_s5] sm:$0xff]  ;;  %1371 = vmatprep.subr.mxu0 %v340_v47  ;;  %v335_v52 = vld [vmem:[%s2016_s5 + $0x18] sm:$0xff] }
   0xb   :  { %v1496_v50 = vpack.c.bf16 %v333_v49, %v332_v48  ;;  %v1500_v53 = vpack.c.bf16 %v335_v52, %v334_v51  ;;  %1372 = vmatpush3.msra.mxu0 %v340_v47  ;;  %v1214_v26 = vld [vmem:[%s2013_s2] ss:$0 sm:$0xff] }
   0xc   :  { %1471 = vmatpush3.bf16.msra.mxu1 %v1468_v10  ;;  %1374 = vmatmul.mubr.msk.f32.vlgmr.msra.gmra.mrb[4].mxu0 %vm40_vm0, %v1676_v4  ;;  %v336_v35 = vld [vmem:[%s2016_s5 + $0x20] sm:$0xff] }
   0xd   :  { %1473 = vmatprep.subr.bf16.mxu1 %v1472_v14  ;;  %1497 = vmatprep.subr.bf16.mxu0 %v1496_v50  ;;  %v512_v48 = vld [vmem:[%s2019_s8] sm:$0xff] }
   0xe   :  { %1499 = vmatpush3.bf16.msra.mxu0 %v1496_v50  ;;  %v1220_v49 = vld [vmem:[%s2018_s7] ss:$0 sm:$0xff] }
   0xf   :  { %1501 = vmatprep.subr.bf16.mxu0 %v1500_v53 }
  0x10   :  { %1475 = vmatpush3.bf16.msra.mxu1 %v1472_v14 }
  0x11   :  { %1477 = vmatprep.subr.bf16.mxu1 %v1476_v21 }
  0x12   :  { %1503 = vmatpush3.bf16.msra.mxu0 %v1500_v53 }
  0x14   :  { %1479 = vmatpush3.bf16.msra.mxu1 %v1476_v21 }
  0x15   :  { %1481 = vmatprep.subr.bf16.mxu1 %v1480_v27 }
  0x18   :  { %1483 = vmatpush3.bf16.msra.mxu1 %v1480_v27 }
  0x19   :  { %1485 = vmatprep.subr.bf16.mxu1 %v1484_v32 }
  0x1c   :  { %1487 = vmatpush3.bf16.msra.mxu1 %v1484_v32 }
  0x1d   :  { %1489 = vmatprep.subr.bf16.mxu1 %v1488_v37 }
  0x20   :  { %1491 = vmatpush3.bf16.msra.mxu1 %v1488_v37  ;;  %v339_v37 = vld [vmem:[%s2016_s5 + $0x38] sm:$0xff] }
  0x21   :  { %1493 = vmatprep.subr.bf16.mxu1 %v1492_v42 }
  0x24   :  { %1495 = vmatpush3.bf16.msra.mxu1 %v1492_v42 }
  0xd7   :  { %v1699_v13 = vpop.f32.mrb[0].mxu0 }
  0xd8   :  { %v1701_v15 = vpop.f32.mrb[1].mxu0 }
  0xd9   :  { %v134_v16 = vrot.slane %v1701_v15, 2  ;;  %v126_v17 = vrot.slane %v1701_v15, 1  ;;  %v142_v23 = vrot.slane %v1701_v15, 3  ;;  %v150_v28 = vrot.slane %v1701_v15, 4 }
  0xda   :  { %v158_v33 = vrot.slane %v1701_v15, 5  ;;  %v166_v44 = vrot.slane %v1701_v15, 6  ;;  %v174_v46 = vrot.slane %v1701_v15, 7 }
  0xdb   :  { %136 = vrot.lane.b32.xlu1 %v134_v16, %s1598_s16  ;;  %128 = vrot.lane.b32.xlu0 %v126_v17, %s1599_s17  ;;  %v1713_v20 = vpop.f32.mrb[2].mxu0 }
  0xdc   :  { %v1715_v22 = vpop.f32.mrb[3].mxu0 }
  0xdd   :  { %v135_v24 = vrot.slane %v1715_v22, 2  ;;  %v143_v29 = vrot.slane %v1715_v22, 3  ;;  %v151_v34 = vrot.slane %v1715_v22, 4  ;;  %v159_v38 = vrot.slane %v1715_v22, 5 }
  0xde   :  { %v127_v39 = vrot.slane %v1715_v22, 1  ;;  %v167_v43 = vrot.slane %v1715_v22, 6  ;;  %v175_v45 = vrot.slane %v1715_v22, 7 }
  0xdf   :  { %144 = vrot.lane.b32.xlu0 %v142_v23, %s1600_s18  ;;  %138 = vrot.lane.b32.xlu1 %v135_v24, %s1598_s16 }
  0xe3   :  { %152 = vrot.lane.b32.xlu0 %v150_v28, %s1601_s23  ;;  %146 = vrot.lane.b32.xlu1 %v143_v29, %s1600_s18 }
  0xe7   :  { %160 = vrot.lane.b32.xlu0 %v158_v33, %s1602_s27  ;;  %154 = vrot.lane.b32.xlu1 %v151_v34, %s1601_s23 }
  0xeb   :  { %162 = vrot.lane.b32.xlu1 %v159_v38, %s1602_s27  ;;  %130 = vrot.lane.b32.xlu0 %v127_v39, %s1599_s17  ;;  %v1215_v39 = vld [vmem:[%s2015_s4] ss:$0 sm:$0xff] }
  0xef   :  { %170 = vrot.lane.b32.xlu1 %v167_v43, %s1603_s19  ;;  %168 = vrot.lane.b32.xlu0 %v166_v44, %s1603_s19 }
  0xf3   :  { %178 = vrot.lane.b32.xlu1 %v175_v45, %s1604_s11  ;;  %176 = vrot.lane.b32.xlu0 %v174_v46, %s1604_s11 }
 0x14d   :  { %v137_v54 = vpop.permute.xlu1 %136  ;;  %v129_v55 = vpop.permute.xlu0 %128 }
 0x14e   :  { %v183_v1 = vsel %vm182_vm1, %v1701_v15, %v129_v55  ;;  %v1793_v15 = vsub.s32 0, %v204_v5 }
 0x14f   :  { %v186_v7 = vsel %vm185_vm2, %v183_v1, %v137_v54 }
 0x151   :  { %v145_v56 = vpop.permute.xlu0 %144  ;;  %v139_v57 = vpop.permute.xlu1 %138 }
 0x152   :  { %v189_v11 = vsel %vm188_vm3, %v186_v7, %v145_v56  ;;  %v1230_v7 = vld [vmem:[%s2014_s3 + $0x80] sm:$0xff] }
 0x155   :  { %v153_v58 = vpop.permute.xlu0 %152  ;;  %v147_v59 = vpop.permute.xlu1 %146 }
 0x156   :  { %v192_v14 = vsel %vm191_vm4, %v189_v11, %v153_v58  ;;  %v1225_v58 = vld [vmem:[%s2012_s1 + $0x18] sm:$0xff] }
 0x159   :  { %v161_v60 = vpop.permute.xlu0 %160  ;;  %v155_v61 = vpop.permute.xlu1 %154 }
 0x15a   :  { %v195_v16 = vsel %vm194_vm5, %v192_v14, %v161_v60  ;;  %v1256_v60 = vld [vmem:[%s2017_s6 + $0x8] sm:$0xff] }
 0x15d   :  { %v163_v63 = vpop.permute.xlu1 %162  ;;  %v131_v0 = vpop.permute.xlu0 %130 }
 0x15e   :  { %v184_v2 = vsel %vm182_vm1, %v1715_v22, %v131_v0 }
 0x15f   :  { %v187_v4 = vsel %vm185_vm2, %v184_v2, %v139_v57 }
 0x160   :  { %v190_v6 = vsel %vm188_vm3, %v187_v4, %v147_v59  ;;  %v1224_v59 = vld [vmem:[%s2012_s1 + $0x10] sm:$0xff] }
 0x161   :  { %v171_v8 = vpop.permute.xlu1 %170  ;;  %v193_v9 = vsel %vm191_vm4, %v190_v6, %v155_v61  ;;  %v169_v10 = vpop.permute.xlu0 %168  ;;  %v1221_v61 = vld [vmem:[%s2020_s9] ss:$0 sm:$0xff] }
 0x162   :  { %v196_v12 = vsel %vm194_vm5, %v193_v9, %v163_v63  ;;  %v198_v18 = vsel %vm197_vm6, %v195_v16, %v169_v10  ;;  %v1233_v10 = vld [vmem:[%s2014_s3 + $0x98] sm:$0xff] }
 0x163   :  { %v199_v17 = vsel %vm197_vm6, %v196_v12, %v171_v8  ;;  %v1231_v8 = vld [vmem:[%s2014_s3 + $0x88] sm:$0xff] }
 0x164   :  { %v1512_v9 = vpack.c.bf16 %v1231_v8, %v1230_v7 }
 0x165   :  { %v179_v19 = vpop.permute.xlu1 %178  ;;  %v177_v21 = vpop.permute.xlu0 %176 }
 0x166   :  { %v202_v22 = vsel %vm200_vm7, %v199_v17, %v179_v19  ;;  %v201_v23 = vsel %vm200_vm7, %v198_v18, %v177_v21  ;;  %1513 = vmatprep.subr.bf16.mxu1 %v1512_v9  ;;  %v1234_v17 = vld [vmem:[%s2014_s3 + $0xa0] sm:$0xff]  ;;  %v1235_v18 = vld [vmem:[%s2014_s3 + $0xa8] sm:$0xff] }
 0x167   :  { %v210_v24 = vrot.slane %v202_v22, %v1793_v15  ;;  %v206_v25 = vrot.slane %v201_v23, %v1793_v15  ;;  %v1520_v21 = vpack.c.bf16 %v1235_v18, %v1234_v17 }
 0x169   :  { %v212_v27 = vadd.f32 %v210_v24, %v1713_v20  ;;  %v211_v28 = vadd.f32 %v206_v25, %v1699_v13  ;;  %v337_v20 = vld [vmem:[%s2016_s5 + $0x28] sm:$0xff]  ;;  %v338_v13 = vld [vmem:[%s2016_s5 + $0x30] sm:$0xff] }
 0x16a   :  { %v1504_v36 = vpack.c.bf16 %v337_v20, %v336_v35  ;;  %v1508_v38 = vpack.c.bf16 %v339_v37, %v338_v13  ;;  %v1236_v25 = vld [vmem:[%s2014_s3 + $0xb0] sm:$0xff]  ;;  %v1241_v20 = vld [vmem:[%s2014_s3 + $0xd8] sm:$0xff] }
 0x16b   :  { %v220_v29 = vadd.f32 %v1214_v26, %v211_v28  ;;  %v221_v30 = vadd.f32 %v1214_v26, %v212_v27  ;;  %v1237_v26 = vld [vmem:[%s2014_s3 + $0xb8] sm:$0xff]  ;;  %v1240_v35 = vld [vmem:[%s2014_s3 + $0xd0] sm:$0xff] }
 0x16c   :  { %1505 = vmatprep.subr.bf16.mxu0 %v1504_v36  ;;  %v1524_v27 = vpack.c.bf16 %v1237_v26, %v1236_v25 }
 0x16d   :  { %vm222_vm8 = vcmp.gt.f32.partialorder %v220_v29, 0.0  ;;  %v224_v31 = vmul.f32 0.1, %v220_v29  ;;  %vm223_vm9 = vcmp.gt.f32.partialorder %v221_v30, 0.0  ;;  %v225_v32 = vmul.f32 0.1, %v221_v30  ;;  %1507 = vmatpush3.bf16.msra.mxu0 %v1504_v36 }
 0x16e   :  { %1509 = vmatprep.subr.bf16.mxu0 %v1508_v38  ;;  %v1532_v36 = vpack.c.bf16 %v1241_v20, %v1240_v35  ;;  %v1255_v20 = vld [vmem:[%s2016_s5 + $0x78] sm:$0xff] }
 0x16f   :  { %v226_v33 = vsel %vm222_vm8, %v220_v29, %v224_v31  ;;  %v227_v34 = vsel %vm223_vm9, %v221_v30, %v225_v32  ;;  %v1238_v30 = vld [vmem:[%s2014_s3 + $0xc0] sm:$0xff]  ;;  %v1239_v31 = vld [vmem:[%s2014_s3 + $0xc8] sm:$0xff]  ;;  %vm1193_vm9 = vcmask 1041409  }
 0x170   :  { %1368 = vmatprep.mubr.f32.mxu1 %v226_v33  ;;  %v1528_v32 = vpack.c.bf16 %v1239_v31, %v1238_v30 }
 0x171   :  { %1369 = vmatmul.mubr.f32.vlgmr.msra.gmra.mrb[0].mxu1 %v227_v34  ;;  %1511 = vmatpush3.bf16.msra.mxu0 %v1508_v38  ;;  %v1242_v38 = vld [vmem:[%s2014_s3 + $0xe0] sm:$0xff] }
 0x172   :  { %1395 = vmatprep.subr.mxu0 %v512_v48  ;;  %1515 = vmatpush3.bf16.msra.mxu1 %v1512_v9 }
 0x244   :  { %v1370_v40 = vpop.f32.mrb[0].mxu1 }
 0x245   :  { %v323_v41 = vadd.f32 %v1370_v40, %v1215_v39  ;;  %v317_v42 = vpop.f32.mrb[1].mxu1 }
 0x246   :  { %v318_v43 = vadd.f32 %v1215_v39, %v317_v42  ;;  %v1243_v39 = vld [vmem:[%s2014_s3 + $0xe8] sm:$0xff] }
 0x247   :  { %v329_v44 = vmul.f32 0.1, %v323_v41  ;;  %vm327_vm10 = vcmp.gt.f32.partialorder %v323_v41, 0.0  ;;  %v1536_v40 = vpack.c.bf16 %v1243_v39, %v1242_v38 }
 0x248   :  { %vm326_vm11 = vcmp.gt.f32.partialorder %v318_v43, 0.0  ;;  %v328_v45 = vmul.f32 0.1, %v318_v43 }
 0x249   :  { %v331_v47 = vsel %vm327_vm10, %v323_v41, %v329_v44  ;;  %v1245_v44 = vld [vmem:[%s2014_s3 + $0xf8] sm:$0xff]  ;;  %vm1196_vm10 = vcmask 58368  }
 0x24a   :  { %v330_v46 = vsel %vm326_vm11, %v318_v43, %v328_v45  ;;  %v1244_v43 = vld [vmem:[%s2014_s3 + $0xf0] sm:$0xff] }
 0x24b   :  { %1392 = vmatprep.mubr.msk.f32.mxu0 %vm191_vm4, %v330_v46  ;;  %v1540_v45 = vpack.c.bf16 %v1245_v44, %v1244_v43 }
 0x24c   :  { %1393 = vmatmul.mubr.msk.f32.vlgmr.msra.gmra.mrb[4].mxu0 %vm191_vm4, %v331_v47 }
 0x24d   :  { %1396 = vmatpush3.msra.mxu0 %v512_v48  ;;  %v1248_v48 = vld [vmem:[%s2016_s5 + $0x40] sm:$0xff] }
 0x24e   :  { %616 = vmatprep.subr.mxu0 %v1225_v58 }
 0x31f   :  { %v1394_v50 = vpop.f32.mrb[4].mxu0 }
 0x320   :  { %v505_v51 = vadd.f32 %v1394_v50, %v1220_v49  ;;  %v488_v52 = vpop.f32.mrb[5].mxu0  ;;  %v1250_v50 = vld [vmem:[%s2016_s5 + $0x50] sm:$0xff] }
 0x321   :  { %v504_v53 = vadd.f32 %v1220_v49, %v488_v52  ;;  %v1249_v49 = vld [vmem:[%s2016_s5 + $0x48] sm:$0xff] }
 0x322   :  { %v509_v54 = vmul.f32 0.1, %v505_v51  ;;  %vm507_vm12 = vcmp.gt.f32.partialorder %v505_v51, 0.0  ;;  %v1544_v52 = vpack.c.bf16 %v1249_v49, %v1248_v48 }
 0x323   :  { %vm506_vm13 = vcmp.gt.f32.partialorder %v504_v53, 0.0  ;;  %v508_v55 = vmul.f32 0.1, %v504_v53 }
 0x324   :  { %v511_v57 = vsel %vm507_vm12, %v505_v51, %v509_v54 }
 0x325   :  { %v510_v56 = vsel %vm506_vm13, %v504_v53, %v508_v55  ;;  %v1251_v53 = vld [vmem:[%s2016_s5 + $0x58] sm:$0xff] }
 0x326   :  { %1397 = vmatprep.mubr.msk.f32.mxu0 %vm40_vm0, %v510_v56  ;;  %v1548_v54 = vpack.c.bf16 %v1251_v53, %v1250_v50 }
 0x327   :  { %1398 = vmatmul.mubr.msk.f32.vlgmr.msra.gmra.mrb[6].mxu0 %vm40_vm0, %v511_v57 }
 0x328   :  { %680 = vmatprep.mubr.f32.mxu0 %v1597_v3  ;;  %617 = vmatpush1.msra.mxu0 %v1224_v59 }
 0x329   :  { %1435 = vmatprep.subr.mxu0 %v1256_v60 }
 0x3fa   :  { %v1399_v62 = vpop.f32.mrb[6].mxu0 }
 0x3fb   :  { %v592_v63 = vpop.f32.mrb[7].mxu0  ;;  %v598_v0 = vadd.f32 %v1399_v62, %v1221_v61 }
 0x3fc   :  { %v593_v1 = vadd.f32 %v1221_v61, %v592_v63 }
 0x3fd   :  { %v604_v4 = vmul.f32 0.1, %v598_v0  ;;  %vm602_vm15 = vcmp.gt.f32.partialorder %v598_v0, 0.0 }
 0x3fe   :  { %vm601_vm14 = vcmp.gt.f32.partialorder %v593_v1, 0.0  ;;  %v603_v2 = vmul.f32 0.1, %v593_v1 }
 0x3ff   :  { %v606_v6 = vsel %vm602_vm15, %v598_v0, %v604_v4 }
 0x400   :  { %v605_v5 = vsel %vm601_vm14, %v593_v1, %v603_v2 }
 0x401   :  { %1226 = vmatmul.mubr.msk.f32.vlgmr.msra.gmra.mrb[8].mxu0 %vm40_vm0, %v605_v5 }
 0x402   :  { %686 = vmatprep.mubr.f32.mxu0 %v1597_v3  ;;  %1436 = vmatpush3.msra.mxu0 %v1256_v60  ;;  %v1232_v3 = vld [vmem:[%s2014_s3 + $0x90] sm:$0xff] }
 0x403   :  { %v1516_v12 = vpack.c.bf16 %v1233_v10, %v1232_v3  ;;  %1545 = vmatprep.subr.bf16.mxu0 %v1544_v52 }
 0x405   :  { %1227 = vmatmul.mubr.msk.f32.gmra.mrb[10].mxu0 %vm40_vm0, %v606_v6  ;;  %1517 = vmatprep.subr.bf16.mxu1 %v1516_v12 }
 0x406   :  { %1437 = vmatprep.mubr.msk.f32.mxu0 %vm40_vm0, %v605_v5  ;;  %1519 = vmatpush3.bf16.msra.mxu1 %v1516_v12 }
 0x407   :  { %1521 = vmatprep.subr.bf16.mxu1 %v1520_v21 }
 0x409   :  { %1438 = vmatmul.mubr.msk.f32.vlgmr.msra.gmra.mrb[12].mxu0 %vm40_vm0, %v606_v6 }
 0x40a   :  { %1523 = vmatpush3.bf16.msra.mxu1 %v1520_v21  ;;  %1547 = vmatpush3.bf16.msra.mxu0 %v1544_v52 }
 0x40b   :  { %1525 = vmatprep.subr.bf16.mxu1 %v1524_v27  ;;  %1549 = vmatprep.subr.bf16.mxu0 %v1548_v54 }
 0x40e   :  { %1527 = vmatpush3.bf16.msra.mxu1 %v1524_v27  ;;  %1551 = vmatpush3.bf16.msra.mxu0 %v1548_v54 }
 0x40f   :  { %1529 = vmatprep.subr.bf16.mxu1 %v1528_v32 }
 0x412   :  { %1531 = vmatpush3.bf16.msra.mxu1 %v1528_v32 }
 0x413   :  { %1533 = vmatprep.subr.bf16.mxu1 %v1532_v36 }
 0x416   :  { %1535 = vmatpush3.bf16.msra.mxu1 %v1532_v36 }
 0x417   :  { %1537 = vmatprep.subr.bf16.mxu1 %v1536_v40 }
 0x41a   :  { %1539 = vmatpush3.bf16.msra.mxu1 %v1536_v40 }
 0x41b   :  { %1541 = vmatprep.subr.bf16.mxu1 %v1540_v45 }
 0x41e   :  { %1543 = vmatpush3.bf16.msra.mxu1 %v1540_v45  ;;  %v1263_v45 = vld [vmem:[%s2019_s8 + $0x8] sm:$0xff] }
 0x4d4   :  { %v1862_v11 = vpop.f32.mrb[8].mxu0 }
 0x4d5   :  { %v1864_v14 = vpop.f32.mrb[9].mxu0 }
 0x4d6   :  { %v695_v16 = vrot.slane %v1864_v14, 1  ;;  %v703_v23 = vrot.slane %v1864_v14, 2  ;;  %v711_v28 = vrot.slane %v1864_v14, 3  ;;  %v719_v33 = vrot.slane %v1864_v14, 4 }
 0x4d7   :  { %v727_v13 = vrot.slane %v1864_v14, 5  ;;  %v735_v41 = vrot.slane %v1864_v14, 6  ;;  %v743_v46 = vrot.slane %v1864_v14, 7 }
 0x4d8   :  { %697 = vrot.lane.b32.xlu0 %v695_v16, %s1599_s17  ;;  %v1874_v19 = vpop.f32.mrb[10].mxu0 }
 0x4d9   :  { %v1876_v22 = vpop.f32.mrb[11].mxu0 }
 0x4da   :  { %v696_v24 = vrot.slane %v1876_v22, 1  ;;  %v704_v29 = vrot.slane %v1876_v22, 2  ;;  %v712_v34 = vrot.slane %v1876_v22, 3  ;;  %v720_v37 = vrot.slane %v1876_v22, 4 }
 0x4db   :  { %v728_v42 = vrot.slane %v1876_v22, 5  ;;  %v736_v47 = vrot.slane %v1876_v22, 6  ;;  %v744_v51 = vrot.slane %v1876_v22, 7 }
 0x4dc   :  { %705 = vrot.lane.b32.xlu0 %v703_v23, %s1598_s16  ;;  %699 = vrot.lane.b32.xlu1 %v696_v24, %s1599_s17 }
 0x4e0   :  { %713 = vrot.lane.b32.xlu0 %v711_v28, %s1600_s18  ;;  %707 = vrot.lane.b32.xlu1 %v704_v29, %s1598_s16 }
 0x4e4   :  { %721 = vrot.lane.b32.xlu0 %v719_v33, %s1601_s23  ;;  %715 = vrot.lane.b32.xlu1 %v712_v34, %s1600_s18 }
 0x4e8   :  { %729 = vrot.lane.b32.xlu0 %v727_v13, %s1602_s27  ;;  %723 = vrot.lane.b32.xlu1 %v720_v37, %s1601_s23  ;;  %v1247_v13 = vld [vmem:[%s2015_s4 + $0x1] ss:$0 sm:$0xff] }
 0x4ec   :  { %737 = vrot.lane.b32.xlu0 %v735_v41, %s1603_s19  ;;  %731 = vrot.lane.b32.xlu1 %v728_v42, %s1602_s27 }
 0x4f0   :  { %745 = vrot.lane.b32.xlu0 %v743_v46, %s1604_s11  ;;  %739 = vrot.lane.b32.xlu1 %v736_v47, %s1603_s19  ;;  %v1262_v46 = vld [vmem:[%s2018_s7 + $0x1] ss:$0 sm:$0xff]  ;;  %s1605_s7 = smov [#allocation2]  }
 0x4f4   :  { %747 = vrot.lane.b32.xlu1 %v744_v51, %s1604_s11 }
 0x54a   :  { %v698_v55 = vpop.permute.xlu0 %697 }
 0x54b   :  { %v751_v0 = vsel %vm182_vm1, %v1864_v14, %v698_v55  ;;  %v1265_v55 = vld [vmem:[%s2020_s9 + $0x1] ss:$0 sm:$0xff]  ;;  %s1204_s9 = sshll.u32 %s1605_s7, 4  ;;  %s1205_s9 = int_to_ptr.vmem [resolvable:$true] %s1204_s9 }
 0x54c   :  { %s1573_s21 = scalar_lea.vmem %s1205_s9, 32  ;;  %p1578_p1 = scmp.lt.s32.totalorder %s1205_s9, %s1205_s9 }
 0x54d   :  { %p1574_p0 = scmp.ne.s32.totalorder %s1205_s9, %s1573_s21  ;;  %p1579_p2 = scmp.lt.s32.totalorder %s1573_s21, %s1573_s21 }
 0x54e   :  { %v706_v56 = vpop.permute.xlu0 %705  ;;  %v700_v57 = vpop.permute.xlu1 %699 }
 0x54f   :  { %v753_v1 = vsel %vm185_vm2, %v751_v0, %v706_v56  ;;  %v752_v7 = vsel %vm182_vm1, %v1876_v22, %v700_v57  ;;  %v1229_v22 = vld [vmem:[%s2013_s2 + $0x1] ss:$0 sm:$0xff]  ;;  %p1580_p3 = por %p1579_p2, %p1578_p1 }
 0x551   :  { %p1581_p4 = pnand %p1580_p3, %p1574_p0 }
 0x552   :  { %v714_v58 = vpop.permute.xlu0 %713  ;;  %v708_v59 = vpop.permute.xlu1 %707 }
 0x553   :  { %v755_v5 = vsel %vm188_vm3, %v753_v1, %v714_v58  ;;  %v754_v9 = vsel %vm185_vm2, %v752_v7, %v708_v59 }
 0x556   :  { %v722_v60 = vpop.permute.xlu0 %721  ;;  %v716_v61 = vpop.permute.xlu1 %715 }
 0x557   :  { %v757_v6 = vsel %vm191_vm4, %v755_v5, %v722_v60  ;;  %v756_v14 = vsel %vm188_vm3, %v754_v9, %v716_v61 }
 0x55a   :  { %v730_v62 = vpop.permute.xlu0 %729  ;;  %v724_v63 = vpop.permute.xlu1 %723 }
 0x55b   :  { %v759_v8 = vsel %vm194_vm5, %v757_v6, %v730_v62  ;;  %v758_v17 = vsel %vm191_vm4, %v756_v14, %v724_v63 }
 0x55e   :  { %v738_v2 = vpop.permute.xlu0 %737  ;;  %v732_v4 = vpop.permute.xlu1 %731 }
 0x55f   :  { %v761_v3 = vsel %vm197_vm6, %v759_v8, %v738_v2  ;;  %v760_v21 = vsel %vm194_vm5, %v758_v17, %v732_v4 }
 0x562   :  { %v746_v10 = vpop.permute.xlu0 %745  ;;  %v740_v12 = vpop.permute.xlu1 %739 }
 0x563   :  { %v763_v16 = vsel %vm200_vm7, %v761_v3, %v746_v10  ;;  %v762_v24 = vsel %vm197_vm6, %v760_v21, %v740_v12 }
 0x564   :  { %v768_v18 = vrot.slane %v763_v16, %v1793_v15 }
 0x566   :  { %v773_v23 = vadd.f32 %v768_v18, %v1862_v11  ;;  %v748_v25 = vpop.permute.xlu1 %747  ;;  %v1252_v11 = vld [vmem:[%s2016_s5 + $0x60] sm:$0xff] }
 0x567   :  { %v764_v26 = vsel %vm200_vm7, %v762_v24, %v748_v25 }
 0x568   :  { %v772_v27 = vrot.slane %v764_v26, %v1793_v15  ;;  %v783_v28 = vadd.f32 %v1229_v22, %v773_v23  ;;  %v1253_v15 = vld [vmem:[%s2016_s5 + $0x68] sm:$0xff] }
 0x569   :  { %v1552_v35 = vpack.c.bf16 %v1253_v15, %v1252_v11 }
 0x56a   :  { %v774_v29 = vadd.f32 %v772_v27, %v1874_v19  ;;  %vm785_vm1 = vcmp.gt.f32.partialorder %v783_v28, 0.0  ;;  %v787_v30 = vmul.f32 0.1, %v783_v28  ;;  %v1254_v19 = vld [vmem:[%s2016_s5 + $0x70] sm:$0xff] }
 0x56b   :  { %1553 = vmatprep.subr.bf16.mxu0 %v1552_v35  ;;  %v1556_v36 = vpack.c.bf16 %v1255_v20, %v1254_v19 }
 0x56c   :  { %v784_v31 = vadd.f32 %v1229_v22, %v774_v29  ;;  %v789_v32 = vsel %vm785_vm1, %v783_v28, %v787_v30  ;;  %1555 = vmatpush3.bf16.msra.mxu0 %v1552_v35 }
 0x56d   :  { %1432 = vmatprep.mubr.f32.mxu1 %v789_v32  ;;  %1557 = vmatprep.subr.bf16.mxu0 %v1556_v36 }
 0x56e   :  { %vm786_vm2 = vcmp.gt.f32.partialorder %v784_v31, 0.0  ;;  %v788_v33 = vmul.f32 0.1, %v784_v31 }
 0x570   :  { %v790_v34 = vsel %vm786_vm2, %v784_v31, %v788_v33  ;;  %1559 = vmatpush3.bf16.msra.mxu0 %v1556_v36 }
 0x571   :  { %1433 = vmatmul.mubr.f32.vlgmr.msra.gmra.mrb[2].mxu1 %v790_v34  ;;  %1459 = vmatprep.subr.mxu0 %v1263_v45 }
 0x644   :  { %v1434_v37 = vpop.f32.mrb[2].mxu1 }
 0x645   :  { %v888_v38 = vadd.f32 %v1434_v37, %v1247_v13  ;;  %v882_v39 = vpop.f32.mrb[3].mxu1 }
 0x646   :  { %v883_v40 = vadd.f32 %v1247_v13, %v882_v39 }
 0x647   :  { %v894_v41 = vmul.f32 0.1, %v888_v38  ;;  %vm892_vm3 = vcmp.gt.f32.partialorder %v888_v38, 0.0 }
 0x648   :  { %vm891_vm5 = vcmp.gt.f32.partialorder %v883_v40, 0.0  ;;  %v893_v42 = vmul.f32 0.1, %v883_v40 }
 0x649   :  { %v896_v44 = vsel %vm892_vm3, %v888_v38, %v894_v41 }
 0x64a   :  { %v895_v43 = vsel %vm891_vm5, %v883_v40, %v893_v42 }
 0x64b   :  { %1456 = vmatprep.mubr.msk.f32.mxu0 %vm191_vm4, %v895_v43 }
 0x64c   :  { %1457 = vmatmul.mubr.msk.f32.vlgmr.msra.gmra.mrb[12].mxu0 %vm191_vm4, %v896_v44 }
 0x64d   :  { %1460 = vmatpush3.msra.mxu0 %v1263_v45 }
 0x71f   :  { %v1458_v47 = vpop.f32.mrb[12].mxu0 }
 0x720   :  { %v1073_v48 = vadd.f32 %v1458_v47, %v1262_v46  ;;  %v1055_v49 = vpop.f32.mrb[13].mxu0 }
 0x721   :  { %v1072_v50 = vadd.f32 %v1262_v46, %v1055_v49 }
 0x722   :  { %v1077_v51 = vmul.f32 0.1, %v1073_v48  ;;  %vm1075_vm6 = vcmp.gt.f32.partialorder %v1073_v48, 0.0 }
 0x723   :  { %vm1074_vm7 = vcmp.gt.f32.partialorder %v1072_v50, 0.0  ;;  %v1076_v52 = vmul.f32 0.1, %v1072_v50 }
 0x724   :  { %v1079_v54 = vsel %vm1075_vm6, %v1073_v48, %v1077_v51 }
 0x725   :  { %v1078_v53 = vsel %vm1074_vm7, %v1072_v50, %v1076_v52 }
 0x726   :  { %1461 = vmatprep.mubr.msk.f32.mxu0 %vm40_vm0, %v1078_v53 }
 0x727   :  { %1462 = vmatmul.mubr.msk.f32.vlgmr.msra.gmra.mrb[14].mxu0 %vm40_vm0, %v1079_v54 }
 0x7fa   :  { %v1463_v56 = vpop.f32.mrb[14].mxu0 }
 0x7fb   :  { %v1168_v57 = vadd.f32 %v1463_v56, %v1265_v55  ;;  %v1162_v58 = vpop.f32.mrb[15].mxu0 }
 0x7fc   :  { %v1163_v59 = vadd.f32 %v1265_v55, %v1162_v58 }
 0x7fd   :  { %vm1172_vm4 = vcmp.gt.f32.partialorder %v1168_v57, 0.0  ;;  %v1174_v60 = vmul.f32 0.1, %v1168_v57 }
 0x7fe   :  { %vm1171_vm8 = vcmp.gt.f32.partialorder %v1163_v59, 0.0  ;;  %v1173_v61 = vmul.f32 0.1, %v1163_v59 }
 0x7ff   :  { %v1176_v62 = vsel %vm1172_vm4, %v1168_v57, %v1174_v60 }
 0x800   :  { %v1184_v63 = vsel %vm40_vm0, %v1176_v62, 0.0  ;;  %v1175_v0 = vsel %vm1171_vm8, %v1163_v59, %v1173_v61 }
 0x801   :  { %v1185_v1 = vrot.slane %v1184_v63, 4  ;;  %v1177_v2 = vsel %vm40_vm0, %v1175_v0, 0.0 }
 0x802   :  { %v1178_v4 = vrot.slane %v1177_v2, 4 }
 0x803   :  { %v1186_v5 = vadd.f32 %v1185_v1, %v1184_v63 }
 0x804   :  { %v1179_v6 = vadd.f32 %v1178_v4, %v1177_v2 }
 0x805   :  { %v1187_v7 = vrot.slane %v1186_v5, 2 }
 0x806   :  { %v1180_v8 = vrot.slane %v1179_v6, 2 }
 0x807   :  { %v1188_v9 = vadd.f32 %v1187_v7, %v1186_v5 }
 0x808   :  { %v1181_v3 = vadd.f32 %v1180_v8, %v1179_v6 }
 0x809   :  { %v1189_v10 = vrot.slane %v1188_v9, 1 }
 0x80a   :  { %v1182_v12 = vrot.slane %v1181_v3, 1 }
 0x80b   :  { %v1190_v14 = vadd.f32 %v1189_v10, %v1188_v9 }
 0x80c   :  { %v1183_v16 = vadd.f32 %v1182_v12, %v1181_v3 }
 0x80e   :  { %v1194_v17 = vsel %vm1193_vm9, %v1190_v14, %v1183_v16 }
 0x80f   :  { %1197 = vst.msk [vmem:[#allocation2] sm:$0x3] %vm1196_vm10, %v1194_v17 }
 0x810   :  { %1584 = shalt.err (!%p1581_p4)
}
 0x811   :  { %s1585_s24 = scalar_lea.hbm %s2021_s10, 32 }
 0x812   :  { %p1586_p5 = scmp.ne.s32.totalorder %s2021_s10, %s1585_s24  ;;  %p1589_p6 = scmp.lt.u32.totalorder %s1585_s24, %s2021_s10 }
 0x814   :  { %p1591_p7 = pnand %p1589_p6, %p1586_p5 }
 0x816   :  { %1594 = shalt.err (!%p1591_p7)
}
 0x817   :  { %1207 = dma.vmem_to_hbm [thread:$0]  %s1205_s9, 32, %s2021_s10, [#allocation3]  }
 0x818   :  { %1595 = dma.done.wait [#allocation3], 32  }
 0x819   :  { %1596 = vsyncadd [#allocation3], 4294967264 }
 0x81a   :  { %1211 = vsyncpa [#allocation3], 1 }

</bundles_post_ra>
